<compile_context>
chip_gen: v6e
topology: v6e:2x2x1
jax: 0.10.0
libtpu: 0.0.40
codegen_flags: <defaults>
</compile_context>

<pallas_src>
import jax
import jax.numpy as jnp
from jax.experimental import pallas as pl
from jax.experimental.pallas import tpu as pltpu

INPUT_SIZE = 1000
HIDDEN_SIZE = 64
OUTPUT_SIZE = 2


def email_classifier_kernel(x_ref, w1_ref, b1_ref, w2_ref, b2_ref, o_ref):
    # fc1: [TB, in] @ [in, hidden] on the MXU, bf16 operands, f32 accumulation.
    x = x_ref[...]
    if x.dtype != jnp.bfloat16:          # only cast if caller streamed f32
        x = x.astype(jnp.bfloat16)
    h = jnp.dot(x, w1_ref[...], preferred_element_type=jnp.float32)
    # bias + ReLU in f32 on the VPU.
    h = jnp.maximum(h + b1_ref[...], 0.0)
    # fc2: [TB, hidden] @ [hidden, 2].  Tiny N=2 matmul; kept on the MXU.
    logits = jnp.dot(h.astype(jnp.bfloat16), w2_ref[...],
                     preferred_element_type=jnp.float32)
    logits = logits + b2_ref[...]
    # 2-class softmax == sigmoid of the logit difference (exactly normalized,
    # no cross-lane reduction, no approximate reciprocal).
    d = logits[:, 1:2] - logits[:, 0:1]               # [TB, 1]
    p1 = 1.0 / (1.0 + jnp.exp(-d))                    # EUP exp + cheap divide
    p0 = 1.0 - p1
    o_ref[:, 0:1] = p0.astype(o_ref.dtype)
    o_ref[:, 1:2] = p1.astype(o_ref.dtype)


def _round_up(n, m):
    return ((n + m - 1) // m) * m


def email_classifier_forward(x, w1, b1, w2, b2, *, block_b=512):
    """x: [B, INPUT_SIZE] (f32 or bf16).  Returns softmax probs [B, OUTPUT_SIZE] f32."""
    B = x.shape[0]
    # Sublane alignment for the batch-tiled x block: 8 rows for f32, 16 for bf16.
    align = 16 if x.dtype == jnp.bfloat16 else 8

    # Batch tile: at most block_b rows, sublane-aligned; collapses for small batches.
    tb = min(block_b, _round_up(B, align))
    if B >= 2 * align:
        # v7x megacore: keep >= 2 "parallel" batch tiles so both TensorCores stay busy.
        tb = min(tb, max(align, _round_up(pl.cdiv(B, 2), align)))
    b_pad = _round_up(B, tb)
    if b_pad != B:
        x = jnp.pad(x, ((0, b_pad - B), (0, 0)))       # padded rows sliced off below

    grid = (b_pad // tb,)

    x_bytes = x.dtype.itemsize
    w_bytes = w1.dtype.itemsize
    bytes_accessed = (
        b_pad * INPUT_SIZE * x_bytes                    # x stream (dominant)
        + INPUT_SIZE * HIDDEN_SIZE * w_bytes            # w1 (resident, one DMA)
        + HIDDEN_SIZE * OUTPUT_SIZE * w_bytes
        + (HIDDEN_SIZE + OUTPUT_SIZE) * 4
        + b_pad * OUTPUT_SIZE * 4                       # output writeback
    )
    # Double-buffered x/out tiles + resident weights; only raise the scoped-VMEM
    # limit (16 MiB default on v5e) when large tiles actually need the headroom.
    vmem_est = (2 * tb * INPUT_SIZE * x_bytes
                + 2 * tb * OUTPUT_SIZE * 4
                + (INPUT_SIZE * HIDDEN_SIZE + HIDDEN_SIZE * OUTPUT_SIZE) * w_bytes
                + (HIDDEN_SIZE + OUTPUT_SIZE) * 4)
    vmem_limit = (64 << 20) if vmem_est > (12 << 20) else None

    out = pl.pallas_call(
        email_classifier_kernel,
        out_shape=jax.ShapeDtypeStruct((b_pad, OUTPUT_SIZE), jnp.float32),
        grid=grid,
        in_specs=[
            pl.BlockSpec((tb, INPUT_SIZE), lambda i: (i, 0)),           # x: batch-tiled
            pl.BlockSpec((INPUT_SIZE, HIDDEN_SIZE), lambda i: (0, 0)),  # w1: resident
            pl.BlockSpec((1, HIDDEN_SIZE), lambda i: (0, 0)),           # b1: resident
            pl.BlockSpec((HIDDEN_SIZE, OUTPUT_SIZE), lambda i: (0, 0)), # w2: resident
            pl.BlockSpec((1, OUTPUT_SIZE), lambda i: (0, 0)),           # b2: resident
        ],
        out_specs=pl.BlockSpec((tb, OUTPUT_SIZE), lambda i: (i, 0)),
        compiler_params=pltpu.CompilerParams(
            dimension_semantics=("parallel",),   # v7x: shard batch tiles over 2 TCs
            vmem_limit_bytes=vmem_limit,
        ),
        cost_estimate=pl.CostEstimate(
            flops=2 * b_pad * (INPUT_SIZE * HIDDEN_SIZE + HIDDEN_SIZE * OUTPUT_SIZE),
            transcendentals=b_pad,               # one exp (sigmoid) per row
            bytes_accessed=bytes_accessed,
        ),
    )(x, w1, b1, w2, b2)
    return out[:B]


def init_params(key):
    """nn.Linear-style uniform(-1/sqrt(fan_in), +1/sqrt(fan_in)) init.
    Weights are stored [in_features, out_features] and pre-cast to bf16 so the
    kernel's MXU operands need no per-tile cast; biases stay f32."""
    k1, k2, k3, k4 = jax.random.split(key, 4)
    bound1 = 1.0 / jnp.sqrt(INPUT_SIZE)
    bound2 = 1.0 / jnp.sqrt(HIDDEN_SIZE)
    w1 = jax.random.uniform(k1, (INPUT_SIZE, HIDDEN_SIZE), jnp.float32, -bound1, bound1)
    b1 = jax.random.uniform(k2, (1, HIDDEN_SIZE), jnp.float32, -bound1, bound1)
    w2 = jax.random.uniform(k3, (HIDDEN_SIZE, OUTPUT_SIZE), jnp.float32, -bound2, bound2)
    b2 = jax.random.uniform(k4, (1, OUTPUT_SIZE), jnp.float32, -bound2, bound2)
    return w1.astype(jnp.bfloat16), b1, w2.astype(jnp.bfloat16), b2


def reference_forward_f32(x, w1, b1, w2, b2):
    xf = x.astype(jnp.float32)
    h = jnp.maximum(xf @ w1.astype(jnp.float32) + b1, 0.0)
    logits = h @ w2.astype(jnp.float32) + b2
    return jax.nn.softmax(logits, axis=1)


def reference_forward_matched(x, w1, b1, w2, b2):
    """Reference with the same bf16-operand / f32-accumulate precision as the kernel."""
    h = jnp.dot(x.astype(jnp.bfloat16), w1.astype(jnp.bfloat16),
                preferred_element_type=jnp.float32) + b1
    h = jnp.maximum(h, 0.0)
    logits = jnp.dot(h.astype(jnp.bfloat16), w2.astype(jnp.bfloat16),
                     preferred_element_type=jnp.float32) + b2
    return jax.nn.softmax(logits, axis=1)


if __name__ == "__main__":
    key = jax.random.PRNGKey(0)
    kx1, kx2, kp = jax.random.split(key, 3)

    w1, b1, w2, b2 = init_params(kp)

    # Case 1: tiny f32 batch (single grid step, tile collapses to the padded batch).
    x_small = jax.random.normal(kx1, (4, INPUT_SIZE), jnp.float32)
    out_small = jax.block_until_ready(
        email_classifier_forward(x_small, w1, b1, w2, b2))

    # Case 2: ragged multi-tile batch with caller-provided bf16 features
    # (exercises padding, pipelining, and the halved-x-stream path).
    x_big = jax.random.normal(kx2, (40, INPUT_SIZE), jnp.float32).astype(jnp.bfloat16)
    out_big = jax.block_until_ready(
        email_classifier_forward(x_big, w1, b1, w2, b2, block_b=16))

    for x, out in ((x_small, out_small), (x_big, out_big)):
        assert out.shape == (x.shape[0], OUTPUT_SIZE)
        ref_m = reference_forward_matched(x, w1, b1, w2, b2)
        ref_f = reference_forward_f32(x, w1, b1, w2, b2)
        assert jnp.allclose(out, ref_m, atol=2e-3), "mismatch vs matched-precision reference"
        assert jnp.allclose(out, ref_f, atol=3e-2), "mismatch vs f32 reference"
        # rows of the softmax must sum to 1 (exact up to f32 rounding now)
        assert jnp.allclose(jnp.sum(out, axis=1), 1.0, atol=1e-5)

    print("KERNEL_OK")
</pallas_src>

<mosaic_0001>
module attributes {stable_mosaic.version = 11 : i64} {
  func.func @email_classifier_kernel(%arg0: i32, %arg1: memref<8x1000xf32, #tpu.memory_space<vmem>>, %arg2: memref<1000x64xbf16, #tpu.memory_space<vmem>>, %arg3: memref<1x64xf32, #tpu.memory_space<vmem>>, %arg4: memref<64x2xbf16, #tpu.memory_space<vmem>>, %arg5: memref<1x2xf32, #tpu.memory_space<vmem>>, %arg6: memref<8x2xf32, #tpu.memory_space<vmem>>) attributes {dimension_semantics = [#tpu.dimension_semantics<parallel>], iteration_bounds = array<i64: 1>, scalar_prefetch = 0 : i64, scratch_operands = 0 : i64, tpu.core_type = #tpu.core_type<tc>, window_params = [{transform_indices = @transform_0, window_bounds = array<i64: 8, 1000>}, {pipeline_mode = #tpu.pipeline_mode<synchronous>, transform_indices = @transform_1, window_bounds = array<i64: 1000, 64>}, {pipeline_mode = #tpu.pipeline_mode<synchronous>, transform_indices = @transform_2, window_bounds = array<i64: 1, 64>}, {pipeline_mode = #tpu.pipeline_mode<synchronous>, transform_indices = @transform_3, window_bounds = array<i64: 64, 2>}, {pipeline_mode = #tpu.pipeline_mode<synchronous>, transform_indices = @transform_4, window_bounds = array<i64: 1, 2>}, {transform_indices = @transform_5, window_bounds = array<i64: 8, 2>}]} {
    %c0 = arith.constant 0 : index
    %c0_0 = arith.constant 0 : index
    %0 = vector.load %arg1[%c0, %c0_0] : memref<8x1000xf32, #tpu.memory_space<vmem>>, vector<8x1000xf32>
    %1 = arith.truncf %0 : vector<8x1000xf32> to vector<8x1000xbf16>
    %c0_1 = arith.constant 0 : index
    %c0_2 = arith.constant 0 : index
    %2 = vector.load %arg2[%c0_1, %c0_2] : memref<1000x64xbf16, #tpu.memory_space<vmem>>, vector<1000x64xbf16>
    %cst = arith.constant dense<0.000000e+00> : vector<8x64xf32>
    %3 = tpu.matmul %1, %2, %cst {dimension_numbers = #tpu.dot_dimension_numbers<[1], [0], [0], [1], [0, 0, 1, 1], [], []>} : vector<8x1000xbf16>, vector<1000x64xbf16>, vector<8x64xf32> -> vector<8x64xf32>
    %c0_3 = arith.constant 0 : index
    %c0_4 = arith.constant 0 : index
    %4 = vector.load %arg3[%c0_3, %c0_4] : memref<1x64xf32, #tpu.memory_space<vmem>>, vector<1x64xf32>
    %5 = vector.broadcast %4 : vector<1x64xf32> to vector<8x64xf32>
    %6 = arith.addf %3, %5 : vector<8x64xf32>
    %cst_5 = arith.constant 0.000000e+00 : f32
    %7 = vector.broadcast %cst_5 : f32 to vector<8x64xf32>
    %8 = arith.maximumf %6, %7 : vector<8x64xf32>
    %9 = arith.truncf %8 : vector<8x64xf32> to vector<8x64xbf16>
    %c0_6 = arith.constant 0 : index
    %c0_7 = arith.constant 0 : index
    %10 = vector.load %arg4[%c0_6, %c0_7] : memref<64x2xbf16, #tpu.memory_space<vmem>>, vector<64x2xbf16>
    %cst_8 = arith.constant dense<0.000000e+00> : vector<8x2xf32>
    %11 = tpu.matmul %9, %10, %cst_8 {dimension_numbers = #tpu.dot_dimension_numbers<[1], [0], [0], [1], [0, 0, 1, 1], [], []>} : vector<8x64xbf16>, vector<64x2xbf16>, vector<8x2xf32> -> vector<8x2xf32>
    %c0_9 = arith.constant 0 : index
    %c0_10 = arith.constant 0 : index
    %12 = vector.load %arg5[%c0_9, %c0_10] : memref<1x2xf32, #tpu.memory_space<vmem>>, vector<1x2xf32>
    %13 = vector.broadcast %12 : vector<1x2xf32> to vector<8x2xf32>
    %14 = arith.addf %11, %13 : vector<8x2xf32>
    %15 = vector.extract_strided_slice %14 {offsets = [0, 1], sizes = [8, 1], strides = [1, 1]} : vector<8x2xf32> to vector<8x1xf32>
    %16 = vector.extract_strided_slice %14 {offsets = [0, 0], sizes = [8, 1], strides = [1, 1]} : vector<8x2xf32> to vector<8x1xf32>
    %17 = arith.subf %15, %16 : vector<8x1xf32>
    %cst_11 = arith.constant 0.000000e+00 : f32
    %18 = vector.broadcast %cst_11 : f32 to vector<8x1xf32>
    %19 = arith.subf %18, %17 : vector<8x1xf32>
    %20 = math.exp %19 : vector<8x1xf32>
    %cst_12 = arith.constant 1.000000e+00 : f32
    %21 = vector.broadcast %cst_12 : f32 to vector<8x1xf32>
    %22 = arith.addf %21, %20 : vector<8x1xf32>
    %cst_13 = arith.constant 1.000000e+00 : f32
    %23 = vector.broadcast %cst_13 : f32 to vector<8x1xf32>
    %24 = arith.divf %23, %22 : vector<8x1xf32>
    %cst_14 = arith.constant 1.000000e+00 : f32
    %25 = vector.broadcast %cst_14 : f32 to vector<8x1xf32>
    %26 = arith.subf %25, %24 : vector<8x1xf32>
    %c0_15 = arith.constant 0 : index
    %c0_16 = arith.constant 0 : index
    %27 = vector.load %arg6[%c0_15, %c0_16] : memref<8x2xf32, #tpu.memory_space<vmem>>, vector<8x1xf32>
    tpu.vector_store %arg6[%c0_15, %c0_16], %26 {strides = array<i32>} : memref<8x2xf32, #tpu.memory_space<vmem>>, vector<8x1xf32>,
    %c0_17 = arith.constant 0 : index
    %c1 = arith.constant 1 : index
    %28 = vector.load %arg6[%c0_17, %c1] : memref<8x2xf32, #tpu.memory_space<vmem>>, vector<8x1xf32>
    tpu.vector_store %arg6[%c0_17, %c1], %24 {strides = array<i32>} : memref<8x2xf32, #tpu.memory_space<vmem>>, vector<8x1xf32>,
    return
  }
  func.func @transform_0(%arg0: i32) -> (i32, i32) {
    %c0_i32 = arith.constant 0 : i32
    %c0_i32_0 = arith.constant 0 : i32
    return %arg0, %c0_i32 : i32, i32
  }
  func.func @transform_1(%arg0: i32) -> (i32, i32) {
    %c0_i32 = arith.constant 0 : i32
    %c0_i32_0 = arith.constant 0 : i32
    %c0_i32_1 = arith.constant 0 : i32
    return %c0_i32, %c0_i32_0 : i32, i32
  }
  func.func @transform_2(%arg0: i32) -> (i32, i32) {
    %c0_i32 = arith.constant 0 : i32
    %c0_i32_0 = arith.constant 0 : i32
    %c0_i32_1 = arith.constant 0 : i32
    return %c0_i32, %c0_i32_0 : i32, i32
  }
  func.func @transform_3(%arg0: i32) -> (i32, i32) {
    %c0_i32 = arith.constant 0 : i32
    %c0_i32_0 = arith.constant 0 : i32
    %c0_i32_1 = arith.constant 0 : i32
    return %c0_i32, %c0_i32_0 : i32, i32
  }
  func.func @transform_4(%arg0: i32) -> (i32, i32) {
    %c0_i32 = arith.constant 0 : i32
    %c0_i32_0 = arith.constant 0 : i32
    %c0_i32_1 = arith.constant 0 : i32
    return %c0_i32, %c0_i32_0 : i32, i32
  }
  func.func @transform_5(%arg0: i32) -> (i32, i32) {
    %c0_i32 = arith.constant 0 : i32
    %c0_i32_0 = arith.constant 0 : i32
    return %arg0, %c0_i32 : i32, i32
  }
}

</mosaic_0001>

<bundles_post_ra>
// kernel: tpu_custom_call.1
= control target key start
LH: loop header
LB: loop body
LE: loop exit
PB: predicated region body
PF: predicated region fallthrough
CT: control target
= control target key end

     0   :  { %v1051_v41 = vmov 0   ;;  %vm548_vm0 = vcmask 1043456   ;;  %vm544_vm1 = vcmask 850944   ;;  %vm1053_vm2 = vmmov 0   ;;  %s1055_s19 = smov 127   ;;  %s1338_s1 = inlined_call_operand.vmem [shape: bf16[1000,64], index: 1, kind: input, shape index: {}]   ;;  %s1339_s0 = inlined_call_operand.vmem [shape: f32[8,1000], index: 0, kind: input, shape index: {}]   ;;  %s1340_s3 = inlined_call_operand.vmem [shape: bf16[64,2], index: 3, kind: input, shape index: {}]   ;;  %s1341_s2 = inlined_call_operand.vmem [shape: f32[1,64], index: 2, kind: input, shape index: {}]   ;;  %s1342_s4 = inlined_call_operand.vmem [shape: f32[1,2], index: 4, kind: input, shape index: {}]   ;;  %s1343_s5 = inlined_call_operand.vmem [shape: f32[8,2], index: 5, kind: output, shape index: {}]  }
   0x1   :  { %v980_v0 = vld [vmem:[%s1338_s1 + $0x78] sm:$0xff]   ;;  %v984_v4 = vld [vmem:[%s1338_s1 + $0x70] sm:$0xff]   ;;  %v988_v8 = vld [vmem:[%s1338_s1 + $0x68] sm:$0xff]   ;;  %vm753_vm3 = vcmask 523264   ;;  %vm813_vm4 = vcmask 7168   ;;  %vm815_vm5 = vcmask 15368  }
   0x2   :  { %v981_v1 = vld [vmem:[%s1338_s1 + $0xf8] sm:$0xff]   ;;  %892 = vmatprep.subr.bf16.mxu0 %v980_v0  ;;  %v985_v5 = vld [vmem:[%s1338_s1 + $0xf0] sm:$0xff]   ;;  %v989_v9 = vld [vmem:[%s1338_s1 + $0xe8] sm:$0xff]  }
   0x3   :  { %v982_v2 = vld [vmem:[%s1338_s1 + $0x38] sm:$0xff]   ;;  %914 = vmatprep.subr.bf16.mxu1 %v981_v1  ;;  %v986_v6 = vld [vmem:[%s1338_s1 + $0x30] sm:$0xff]   ;;  %v990_v10 = vld [vmem:[%s1338_s1 + $0x28] sm:$0xff]  }
   0x4   :  { %v983_v3 = vld [vmem:[%s1338_s1 + $0xb8] sm:$0xff]   ;;  %893 = vmatpush3.bf16.msra.mxu0 %v982_v2  ;;  %v987_v7 = vld [vmem:[%s1338_s1 + $0xb0] sm:$0xff]   ;;  %v991_v11 = vld [vmem:[%s1338_s1 + $0xa8] sm:$0xff]  }
   0x5   :  { %915 = vmatpush3.bf16.msra.mxu1 %v983_v3  ;;  %894 = vmatprep.subr.bf16.mxu0 %v984_v4  ;;  %v992_v12 = vld [vmem:[%s1338_s1 + $0x60] sm:$0xff]   ;;  %v996_v16 = vld [vmem:[%s1338_s1 + $0x58] sm:$0xff]   ;;  %v1000_v20 = vld [vmem:[%s1338_s1 + $0x50] sm:$0xff]  }
   0x6   :  { %916 = vmatprep.subr.bf16.mxu1 %v985_v5  ;;  %v993_v13 = vld [vmem:[%s1338_s1 + $0xe0] sm:$0xff]   ;;  %v997_v17 = vld [vmem:[%s1338_s1 + $0xd8] sm:$0xff]   ;;  %v1001_v21 = vld [vmem:[%s1338_s1 + $0xd0] sm:$0xff]  }
   0x7   :  { %v994_v14 = vld [vmem:[%s1338_s1 + $0x20] sm:$0xff]   ;;  %v998_v18 = vld [vmem:[%s1338_s1 + $0x18] sm:$0xff]   ;;  %v1002_v22 = vld [vmem:[%s1338_s1 + $0x10] sm:$0xff]  }
   0x8   :  { %895 = vmatpush3.bf16.msra.mxu0 %v986_v6  ;;  %v995_v15 = vld [vmem:[%s1338_s1 + $0xa0] sm:$0xff]   ;;  %v999_v19 = vld [vmem:[%s1338_s1 + $0x98] sm:$0xff]   ;;  %v1003_v23 = vld [vmem:[%s1338_s1 + $0x90] sm:$0xff]  }
   0x9   :  { %917 = vmatpush3.bf16.msra.mxu1 %v987_v7  ;;  %896 = vmatprep.subr.bf16.mxu0 %v988_v8  ;;  %v1004_v24 = vld [vmem:[%s1338_s1 + $0x48] sm:$0xff]   ;;  %v1008_v28 = vld [vmem:[%s1338_s1 + $0x40] sm:$0xff]   ;;  %v24_v33 = vld [vmem:[%s1339_s0 + $0x18] sm:$0xff] }
   0xa   :  { %918 = vmatprep.subr.bf16.mxu1 %v989_v9  ;;  %v1005_v25 = vld [vmem:[%s1338_s1 + $0xc8] sm:$0xff]   ;;  %v1009_v29 = vld [vmem:[%s1338_s1 + $0xc0] sm:$0xff]   ;;  %v32_v36 = vpack.c.bf16 %v24_v33, %v24_v33  ;;  %v23_v38 = vld [vmem:[%s1339_s0 + $0x10] sm:$0xff] }
   0xb   :  { %v1006_v26 = vld [vmem:[%s1338_s1 + $0x8] sm:$0xff]   ;;  %v1010_v30 = vld [vmem:[%s1338_s1] sm:$0xff]   ;;  %v31_v39 = vpack.c.bf16 %v23_v38, %v23_v38  ;;  %v1012_v40 = vld [vmem:[%s1338_s1 + $0x178] sm:$0xff]  }
   0xc   :  { %897 = vmatpush3.bf16.msra.mxu0 %v990_v10  ;;  %v1007_v27 = vld [vmem:[%s1338_s1 + $0x88] sm:$0xff]   ;;  %v1011_v31 = vld [vmem:[%s1338_s1 + $0x80] sm:$0xff]   ;;  %624 = vmatprep.mubr.bf16.mxu1 %v32_v36  ;;  %v1013_v42 = vld [vmem:[%s1338_s1 + $0x138] sm:$0xff]  }
   0xd   :  { %919 = vmatpush3.bf16.msra.mxu1 %v991_v11  ;;  %898 = vmatprep.subr.bf16.mxu0 %v992_v12  ;;  %v22_v32 = vld [vmem:[%s1339_s0 + $0x8] sm:$0xff]  ;;  %v21_v34 = vld [vmem:[%s1339_s0] sm:$0xff]  ;;  %v1014_v43 = vld [vmem:[%s1338_s1 + $0x1b8] sm:$0xff]  }
   0xe   :  { %920 = vmatprep.subr.bf16.mxu1 %v993_v13  ;;  %v30_v35 = vpack.c.bf16 %v22_v32, %v22_v32  ;;  %v29_v37 = vpack.c.bf16 %v21_v34, %v21_v34  ;;  %v1015_v44 = vld [vmem:[%s1338_s1 + $0x170] sm:$0xff]   ;;  %v1018_v47 = vld [vmem:[%s1338_s1 + $0x168] sm:$0xff]   ;;  %v1021_v50 = vld [vmem:[%s1338_s1 + $0x160] sm:$0xff]  }
   0xf   :  { %v1016_v45 = vld [vmem:[%s1338_s1 + $0x130] sm:$0xff]   ;;  %v1019_v48 = vld [vmem:[%s1338_s1 + $0x128] sm:$0xff]   ;;  %v1022_v51 = vld [vmem:[%s1338_s1 + $0x120] sm:$0xff]  }
  0x10   :  { %899 = vmatpush3.bf16.msra.mxu0 %v994_v14  ;;  %584 = vmatprep.mubr.bf16.mxu0 %v30_v35  ;;  %v1017_v46 = vld [vmem:[%s1338_s1 + $0x1b0] sm:$0xff]   ;;  %v1020_v49 = vld [vmem:[%s1338_s1 + $0x1a8] sm:$0xff]   ;;  %v1023_v52 = vld [vmem:[%s1338_s1 + $0x1a0] sm:$0xff]  }
  0x11   :  { %921 = vmatpush3.bf16.msra.mxu1 %v995_v15  ;;  %900 = vmatprep.subr.bf16.mxu0 %v996_v16  ;;  %v1024_v53 = vld [vmem:[%s1338_s1 + $0x158] sm:$0xff]   ;;  %v1027_v56 = vld [vmem:[%s1338_s1 + $0x150] sm:$0xff]   ;;  %v1030_v59 = vld [vmem:[%s1338_s1 + $0x148] sm:$0xff]  }
  0x12   :  { %922 = vmatprep.subr.bf16.mxu1 %v997_v17  ;;  %v1025_v54 = vld [vmem:[%s1338_s1 + $0x118] sm:$0xff]   ;;  %v1028_v57 = vld [vmem:[%s1338_s1 + $0x110] sm:$0xff]   ;;  %v1031_v60 = vld [vmem:[%s1338_s1 + $0x108] sm:$0xff]   ;;  %v1052_v17 = vmov 0.0  }
  0x13   :  { %v1026_v55 = vld [vmem:[%s1338_s1 + $0x198] sm:$0xff]   ;;  %v1029_v58 = vld [vmem:[%s1338_s1 + $0x190] sm:$0xff]   ;;  %v26_v61 = vld [vmem:[%s1339_s0 + $0x28] sm:$0xff] }
  0x14   :  { %901 = vmatpush3.bf16.msra.mxu0 %v998_v18  ;;  %v1032_v62 = vld [vmem:[%s1338_s1 + $0x188] sm:$0xff]   ;;  %v34_v63 = vpack.c.bf16 %v26_v61, %v26_v61  ;;  %v1033_v0 = vld [vmem:[%s1338_s1 + $0x140] sm:$0xff]   ;;  %v1036_v4 = vld [vmem:[%s1338_s1 + $0x1f0] ss:$0 sps:$4 sm:$0xff]  }
  0x15   :  { %923 = vmatpush3.bf16.msra.mxu1 %v999_v19  ;;  %902 = vmatprep.subr.bf16.mxu0 %v1000_v20  ;;  %v1034_v1 = vld [vmem:[%s1338_s1 + $0x100] sm:$0xff]   ;;  %v28_v5 = vld [vmem:[%s1339_s0 + $0x38] sm:$0xff]  ;;  %v550_v8 = vsel %vm548_vm0, %v1036_v4, 0  ;;  %v1037_v9 = vld [vmem:[%s1338_s1 + $0x1e8] sm:$0xff]  }
  0x16   :  { %924 = vmatprep.subr.bf16.mxu1 %v1001_v21  ;;  %v1035_v2 = vld [vmem:[%s1338_s1 + $0x180] sm:$0xff]   ;;  %v36_v7 = vpack.c.bf16 %v28_v5, %v28_v5  ;;  %v1039_v11 = vld [vmem:[%s1338_s1 + $0x1d8] sm:$0xff]   ;;  %v1040_v12 = vld [vmem:[%s1338_s1 + $0x1d0] sm:$0xff]  }
  0x17   :  { %v25_v3 = vld [vmem:[%s1339_s0 + $0x20] sm:$0xff]  ;;  %v1041_v13 = vld [vmem:[%s1338_s1 + $0x1c8] sm:$0xff]   ;;  %v27_v15 = vld [vmem:[%s1339_s0 + $0x30] sm:$0xff] }
  0x18   :  { %903 = vmatpush3.bf16.msra.mxu0 %v1002_v22  ;;  %v33_v6 = vpack.c.bf16 %v25_v3, %v25_v3  ;;  %v1038_v10 = vld [vmem:[%s1338_s1 + $0x1e0] sm:$0xff]   ;;  %v35_v16 = vpack.c.bf16 %v27_v15, %v27_v15  ;;  %v1043_v18 = vld [vmem:[%s1340_s3 + $0x18] sm:$0xff]   ;;  %v1044_v19 = vld [vmem:[%s1340_s3 + $0x10] sm:$0xff]  }
  0x19   :  { %925 = vmatpush3.bf16.msra.mxu1 %v1003_v23  ;;  %904 = vmatprep.subr.bf16.mxu0 %v1004_v24  ;;  %v1042_v14 = vld [vmem:[%s1338_s1 + $0x1c0] sm:$0xff]   ;;  %v1045_v20 = vld [vmem:[%s1340_s3 + $0x8] sm:$0xff]  }
  0x1a   :  { %926 = vmatprep.subr.bf16.mxu1 %v1005_v25  ;;  %v1046_v21 = vld [vmem:[%s1340_s3] sm:$0xff]  }
  0x1b   :  { %v821_v35 = vld [vmem:[%s1341_s2] ss:$0 sm:$0xff]  ;;  %s1054_s2 = smov 1  }
  0x1c   :  { %905 = vmatpush3.bf16.msra.mxu0 %v1006_v26 }
  0x1d   :  { %927 = vmatpush3.bf16.msra.mxu1 %v1007_v27  ;;  %906 = vmatprep.subr.bf16.mxu0 %v1008_v28 }
  0x1e   :  { %928 = vmatprep.subr.bf16.mxu1 %v1009_v29 }
  0x20   :  { %907 = vmatpush3.bf16.msra.mxu0 %v1010_v30 }
  0x21   :  { %929 = vmatpush3.bf16.msra.mxu1 %v1011_v31  ;;  %936 = vmatprep.subr.bf16.mxu0 %v1012_v40 }
  0x22   :  { %672 = vmatprep.subr.bf16.mxu1 %v1051_v41 }
  0x23   :  { %585 = vmatmul.mubr.bf16.vlgmr.msra.gmra.mxu0 %v29_v37 }
  0x24   :  { %625 = vmatmul.mubr.bf16.vlgmr.msra.gmra.mxu1 %v31_v39  ;;  %937 = vmatpush3.bf16.msra.mxu0 %v1013_v42 }
  0x25   :  { %673 = vmatpush1.bf16.msra.mxu1 %v1014_v43  ;;  %938 = vmatprep.subr.bf16.mxu0 %v1015_v44 }
  0x26   :  { %674 = vmatprep.subr.bf16.mxu1 %v1051_v41  ;;  %664 = vmatprep.mubr.bf16.mxu0 %v34_v63 }
  0x27   :  { %885 = vmatprep.mubr.msk.bf16.mxu1 %vm544_vm1, %v36_v7 }
  0x28   :  { %939 = vmatpush3.bf16.msra.mxu0 %v1016_v45 }
  0x29   :  { %675 = vmatpush1.bf16.msra.mxu1 %v1017_v46  ;;  %940 = vmatprep.subr.bf16.mxu0 %v1018_v47 }
  0x2a   :  { %676 = vmatprep.subr.bf16.mxu1 %v1051_v41 }
  0x2c   :  { %941 = vmatpush3.bf16.msra.mxu0 %v1019_v48  ;;  %v886_v48 = vld [vmem:[%s1342_s4] ss:$0 sm:$0xff] }
  0x2d   :  { %677 = vmatpush1.bf16.msra.mxu1 %v1020_v49  ;;  %942 = vmatprep.subr.bf16.mxu0 %v1021_v50 }
  0x2e   :  { %678 = vmatprep.subr.bf16.mxu1 %v1051_v41 }
  0x30   :  { %943 = vmatpush3.bf16.msra.mxu0 %v1022_v51 }
  0x31   :  { %679 = vmatpush1.bf16.msra.mxu1 %v1023_v52  ;;  %944 = vmatprep.subr.bf16.mxu0 %v1024_v53 }
  0x32   :  { %680 = vmatprep.subr.bf16.mxu1 %v1051_v41 }
  0x34   :  { %945 = vmatpush3.bf16.msra.mxu0 %v1025_v54 }
  0x35   :  { %681 = vmatpush1.bf16.msra.mxu1 %v1026_v55  ;;  %946 = vmatprep.subr.bf16.mxu0 %v1027_v56 }
  0x36   :  { %682 = vmatprep.subr.bf16.mxu1 %v1051_v41 }
  0x38   :  { %947 = vmatpush3.bf16.msra.mxu0 %v1028_v57 }
  0x39   :  { %683 = vmatpush1.bf16.msra.mxu1 %v1029_v58  ;;  %948 = vmatprep.subr.bf16.mxu0 %v1030_v59 }
  0x3a   :  { %684 = vmatprep.subr.bf16.mxu1 %v1051_v41 }
  0x3c   :  { %949 = vmatpush3.bf16.msra.mxu0 %v1031_v60 }
  0x3d   :  { %685 = vmatpush1.bf16.msra.mxu1 %v1032_v62  ;;  %950 = vmatprep.subr.bf16.mxu0 %v1033_v0 }
  0x3e   :  { %686 = vmatprep.subr.bf16.mxu1 %v1051_v41 }
  0x40   :  { %951 = vmatpush3.bf16.msra.mxu0 %v1034_v1 }
  0x41   :  { %687 = vmatpush1.bf16.msra.mxu1 %v1035_v2  ;;  %963 = vmatprep.subr.bf16.mxu0 %v1052_v17 }
  0x42   :  { %690 = vmatprep.subr.bf16.mxu1 %v1051_v41 }
  0x43   :  { %665 = vmatmul.mubr.bf16.vlgmr.msra.gmra.mxu0 %v33_v6 }
  0x44   :  { %964 = vmatpush3.bf16.msra.mxu0 %v1043_v18  ;;  %971 = vmatprep.mubr.msk.bf16.mxu0 %vm1053_vm2, %v1052_v17 }
  0x45   :  { %691 = vmatpush2.bf16.msra.mxu1 %v550_v8  ;;  %965 = vmatprep.subr.bf16.mxu0 %v1052_v17 }
  0x46   :  { %692 = vmatprep.subr.bf16.mxu1 %v1051_v41 }
  0x48   :  { %966 = vmatpush3.bf16.msra.mxu0 %v1044_v19 }
  0x49   :  { %693 = vmatpush2.bf16.msra.mxu1 %v1037_v9  ;;  %967 = vmatprep.subr.bf16.mxu0 %v1052_v17 }
  0x4a   :  { %694 = vmatprep.subr.bf16.mxu1 %v1051_v41 }
  0x4c   :  { %968 = vmatpush3.bf16.msra.mxu0 %v1045_v20 }
  0x4d   :  { %695 = vmatpush2.bf16.msra.mxu1 %v1038_v10  ;;  %969 = vmatprep.subr.bf16.mxu0 %v1052_v17 }
  0x4e   :  { %696 = vmatprep.subr.bf16.mxu1 %v1051_v41 }
  0x50   :  { %970 = vmatpush3.bf16.msra.mxu0 %v1046_v21 }
  0x51   :  { %697 = vmatpush2.bf16.msra.mxu1 %v1039_v11 }
  0x52   :  { %698 = vmatprep.subr.bf16.mxu1 %v1051_v41 }
  0x55   :  { %699 = vmatpush2.bf16.msra.mxu1 %v1040_v12 }
  0x56   :  { %700 = vmatprep.subr.bf16.mxu1 %v1051_v41 }
  0x59   :  { %701 = vmatpush2.bf16.msra.mxu1 %v1041_v13 }
  0x5a   :  { %702 = vmatprep.subr.bf16.mxu1 %v1051_v41 }
  0x5d   :  { %703 = vmatpush2.bf16.msra.mxu1 %v1042_v14 }
  0x60   :  { %705 = vmatmul.mubr.bf16.vlgmr.msra.gmra.mxu1 %v35_v16 }
  0xe3   :  { %v908_v22 = vpop.f32.mrf.mxu0 }
  0xe4   :  { %v930_v23 = vpop.f32.mrf.mxu1 }
  0xe5   :  { %v909_v24 = vpop.f32.mrf.mxu0 }
  0xe6   :  { %v931_v25 = vpop.f32.mrf.mxu1  ;;  %v910_v34 = vadd.f32 %v909_v24, %v908_v22 }
  0xe7   :  { %v911_v27 = vpop.f32.mrf.mxu0  ;;  %v932_v37 = vadd.f32 %v931_v25, %v930_v23 }
  0xe8   :  { %v933_v26 = vpop.f32.mrf.mxu1  ;;  %v587_v36 = vadd.f32 %v910_v34, %v821_v35 }
  0xe9   :  { %v912_v29 = vpop.f32.mrf.mxu0 }
  0xea   :  { %v934_v28 = vpop.f32.mrf.mxu1  ;;  %v627_v39 = vadd.f32 %v932_v37, %v587_v36 }
 0x103   :  { %v952_v30 = vpop.f32.mrf.mxu0 }
 0x105   :  { %v953_v31 = vpop.f32.mrf.mxu0 }
 0x106   :  { %v954_v38 = vadd.f32 %v953_v31, %v952_v30 }
 0x107   :  { %v955_v32 = vpop.f32.mrf.mxu0 }
 0x108   :  { %v667_v40 = vadd.f32 %v954_v38, %v627_v39 }
 0x109   :  { %v956_v33 = vpop.f32.mrf.mxu0 }
 0x120   :  { %v706_v41 = vpop.f32.mrf.mxu1 }
 0x121   :  { %v707_v42 = vadd.f32 %v706_v41, %v667_v40 }
 0x122   :  { %v708_v43 = vpop.f32.mrf.mxu1 }
 0x123   :  { %v712_v44 = vmax.f32 %v707_v42, 0.0 }
 0x124   :  { %v709_v45 = vpop.f32.mrf.mxu1 }
 0x125   :  { %v713_v46 = vpack.c.bf16 %v712_v44, %v712_v44 }
 0x126   :  { %v710_v47 = vpop.f32.mrf.mxu1 }
 0x127   :  { %972 = vmatmul.mubr.msk.bf16.vlgmr.msra.gmra.mxu0 %vm753_vm3, %v713_v46 }
 0x1e7   :  { %v791_v49 = vpop.f32.mrf.mxu0 }
 0x1e8   :  { %v792_v50 = vadd.f32 %v886_v48, %v791_v49 }
 0x1e9   :  { %v973_v51 = vpop.f32.mrf.mxu0 }
 0x1ea   :  { %798 = vrot.lane.b32.xlu0 %v792_v50, %s1054_s2 }
 0x1eb   :  { %v794_v52 = vpop.f32.mrf.mxu0 }
 0x1ed   :  { %v974_v53 = vpop.f32.mrf.mxu0 }
 0x25c   :  { %v799_v54 = vpop.permute.xlu0 %798 }
 0x25d   :  { %v801_v55 = vsub.f32 %v792_v50, %v799_v54 }
 0x25f   :  { %v802_v56 = vsub.f32 0.0, %v801_v55 }
 0x261   :  { %v803_v57 = vmul.f32 1.442695, %v802_v56 }
 0x263   :  { %1047 = vpow2.f32 %v803_v57 }
 0x270   :  { %v1048_v58 = vpop.eup %1047 }
 0x271   :  { %v805_v59 = vadd.f32 1.0, %v1048_v58 }
 0x273   :  { %1049 = vrcp.f32 %v805_v59 }
 0x280   :  { %v1050_v60 = vpop.eup %1049 }
 0x281   :  { %v808_v61 = vsub.f32 1.0, %v1050_v60 }
 0x283   :  { %810 = vrot.lane.b32.xlu0 %v808_v61, %s1055_s19 }
 0x2f5   :  { %v811_v62 = vpop.permute.xlu0 %810 }
 0x2f6   :  { %814 = vst.msk [vmem:[%s1343_s5] sm:$0xff] %vm813_vm4, %v811_v62 }
 0x2f7   :  { %816 = vst.msk [vmem:[%s1343_s5] sm:$0xff] %vm815_vm5, %v1050_v60 }

</bundles_post_ra>
